<compile_context>
chip_gen: v7x
topology: tpu7x:2x2x1
jax: 0.10.0
libtpu: 0.0.40
codegen_flags: <defaults>
</compile_context>

<pallas_src>
import functools
import math

import jax
import jax.numpy as jnp
import numpy as np
from jax.experimental import pallas as pl
from jax.experimental.pallas import tpu as pltpu


def _dw_con_kernel(x_ref, wdm_ref, wp_ref, wc_ref, bc_ref, o_ref, *, W, HW):
    # x_ref:   (B_blk*nin, HW)      batch-block of images; rows = (image, chan)
    # wdm_ref: (9, B_blk*nin, HW)   depthwise weights with boundary masks folded
    # wp_ref:  (B_blk*nout, B_blk*nin)   block-diagonal pointwise 1x1 weights
    # wc_ref:  (B_blk*nout, B_blk*nout)  block-diagonal final 1x1 weights
    # bc_ref:  (B_blk*nout, 1)           final 1x1 bias (tiled per image)
    # o_ref:   (B_blk*nout, HW)
    x = x_ref[...]                                   # (C_blk, HW) f32

    # ---- depthwise 3x3, padding=1, no bias: 9-tap VPU MAC --------------------
    # Zero-padding boundary masks are already folded into wdm (trace-time
    # constants), so each tap is just roll + mul + add.
    d = x * wdm_ref[4]                               # center tap (dy=0, dx=0)
    for k in (0, 1, 2, 3, 5, 6, 7, 8):
        dy = k // 3 - 1
        dx = k % 3 - 1
        off = dy * W + dx                            # flattened-index offset
        tap = pltpu.roll(x, shift=(-off) % HW, axis=1)   # tap[m] = x[m + off]
        d = d + tap * wdm_ref[k]

    # ---- pointwise 1x1 (no bias) + ReLU ---------------------------------------
    # Both contractions are block-diagonal over the batch block -> a single MXU
    # dot each per grid step.
    p = jnp.maximum(
        jnp.dot(wp_ref[...], d, preferred_element_type=jnp.float32), 0.0)

    # ---- final 1x1 conv (with bias) -------------------------------------------
    out = jnp.dot(wc_ref[...], p, preferred_element_type=jnp.float32) + bc_ref[...]
    o_ref[...] = out.astype(o_ref.dtype)


def _choose_batch_block(N, nin, nout, HW, budget_bytes=8 << 20, min_steps=4):
    """Pick images-per-grid-step: fill f32 sublanes, then grow within a VMEM
    budget while keeping enough grid steps for pipelining / megacore balance."""
    b = max(1, 8 // math.gcd(nin, 8))     # smallest b with (b*nin) % 8 == 0

    def step_bytes(bb):
        act = 2 * 2 * bb * (nin + nout) * HW * 4                   # in+out, 2-buf
        wts = (9 * bb * nin * HW
               + (bb * nout) * (bb * nin + bb * nout + 1)) * 4     # resident wts
        return act + wts

    while (2 * b <= N and pl.cdiv(N, 2 * b) >= min_steps
           and step_bytes(2 * b) <= budget_bytes):
        b *= 2
    return b


def _fold_masks_into_dw_weight(wd, B_blk, H, W):
    """(nin, 9) depthwise weights -> (9, B_blk*nin, H*W) with the zero-padding
    boundary masks folded in (masks built with numpy at trace time)."""
    HW = H * W
    cols = np.arange(HW)
    h = cols // W
    w = cols - h * W
    masks = np.empty((9, HW), np.float32)
    for k in range(9):
        dy, dx = k // 3 - 1, k % 3 - 1
        ok = (h + dy >= 0) & (h + dy < H) & (w + dx >= 0) & (w + dx < W)
        masks[k] = ok.astype(np.float32)
    wd_blk = jnp.tile(wd, (B_blk, 1))                # (B_blk*nin, 9)
    return wd_blk.T[:, :, None] * jnp.asarray(masks)[:, None, :]   # (9, C_blk, HW)


def _block_diag(w, b):
    """(o, i) -> (b*o, b*i) block-diagonal replication (for batch blocking)."""
    o, i = w.shape
    if b == 1:
        return w
    eye = jnp.eye(b, dtype=w.dtype)
    return (eye[:, None, :, None] * w[None, :, None, :]).reshape(b * o, b * i)


def dw_con_apply(params, x_nchw):
    """Forward pass of dw_con: conv1x1(relu(point(depth(x)))), x is NCHW."""
    N, nin, H, W = x_nchw.shape
    nout = params["wp"].shape[0]
    HW = H * W

    # TODO(synk): if HW is not a multiple of 128 or a single batch block exceeds
    # the per-generation VMEM budget (v7x: 64 MiB physical), add spatial tiling
    # with a one-row halo and pad the lane dim; at these feature-map sizes the
    # whole image fits easily and HW=256 is lane-dense.
    B_blk = _choose_batch_block(N, nin, nout, HW)
    n_pad = pl.cdiv(N, B_blk) * B_blk

    x2 = x_nchw.reshape(N * nin, HW)                 # free reshape, no transpose
    if n_pad != N:
        x2 = jnp.pad(x2, ((0, (n_pad - N) * nin), (0, 0)))

    wdm = _fold_masks_into_dw_weight(params["wd"], B_blk, H, W)
    wp_bd = _block_diag(params["wp"], B_blk)
    wc_bd = _block_diag(params["wc"], B_blk)
    bc_bd = jnp.tile(params["bc"], (B_blk, 1))

    kernel = functools.partial(_dw_con_kernel, W=W, HW=HW)

    flops = 2 * N * HW * (9 * nin + nin * nout + nout * nout)
    bytes_accessed = 4 * (N * (nin + nout) * HW
                          + 9 * B_blk * nin * HW
                          + (B_blk * nout) * (B_blk * (nin + nout) + 1))

    out2 = pl.pallas_call(
        kernel,
        out_shape=jax.ShapeDtypeStruct((n_pad * nout, HW), jnp.float32),
        grid_spec=pltpu.PrefetchScalarGridSpec(
            num_scalar_prefetch=0,
            grid=(n_pad // B_blk,),
            in_specs=[
                pl.BlockSpec((B_blk * nin, HW), lambda n: (n, 0)),
                pl.BlockSpec((9, B_blk * nin, HW), lambda n: (0, 0, 0)),
                pl.BlockSpec((B_blk * nout, B_blk * nin), lambda n: (0, 0)),
                pl.BlockSpec((B_blk * nout, B_blk * nout), lambda n: (0, 0)),
                pl.BlockSpec((B_blk * nout, 1), lambda n: (0, 0)),
            ],
            out_specs=pl.BlockSpec((B_blk * nout, HW), lambda n: (n, 0)),
        ),
        compiler_params=pltpu.CompilerParams(
            dimension_semantics=("parallel",)),      # shards steps over v7x TCs
        cost_estimate=pl.CostEstimate(
            flops=flops, transcendentals=0, bytes_accessed=bytes_accessed),
    )(x2, wdm, wp_bd, wc_bd, bc_bd)

    if n_pad != N:
        out2 = out2[:N * nout]
    return out2.reshape(N, nout, H, W)


def init_params(key, nin, nout):
    """Deterministic synthetic params in torch Conv2d weight layouts."""
    k1, k2, k3, k4 = jax.random.split(key, 4)
    wd_t = jax.random.normal(k1, (nin, 1, 3, 3), jnp.float32) * 0.1   # depthwise, groups=nin
    wp_t = jax.random.normal(k2, (nout, nin, 1, 1), jnp.float32) * 0.1
    wc_t = jax.random.normal(k3, (nout, nout, 1, 1), jnp.float32) * 0.1
    bc = jax.random.normal(k4, (nout,), jnp.float32) * 0.1

    params = {
        "wd": wd_t[:, 0, :, :].reshape(nin, 9),      # (nin, 9), tap k = 3*dy + dx
        "wp": wp_t[:, :, 0, 0],                      # (nout, nin)
        "wc": wc_t[:, :, 0, 0],                      # (nout, nout)
        "bc": bc.reshape(nout, 1),                   # (nout, 1)
    }
    torch_style = (wd_t, wp_t, wc_t, bc)
    return params, torch_style


def reference_nchw(x, wd_t, wp_t, wc_t, bc):
    """Pure-JAX reference matching the PyTorch dw_con forward semantics."""
    nin = x.shape[1]
    dn = ("NCHW", "OIHW", "NCHW")
    d = jax.lax.conv_general_dilated(x, wd_t, (1, 1), ((1, 1), (1, 1)),
                                     dimension_numbers=dn,
                                     feature_group_count=nin)
    p = jax.lax.conv_general_dilated(d, wp_t, (1, 1), "VALID", dimension_numbers=dn)
    h = jnp.maximum(p, 0.0)
    y = jax.lax.conv_general_dilated(h, wc_t, (1, 1), "VALID", dimension_numbers=dn)
    return y + bc[None, :, None, None]


if __name__ == "__main__":
    N, nin, nout, H, W = 2, 4, 8, 16, 16

    key = jax.random.PRNGKey(0)
    kx, kp = jax.random.split(key)
    x = jax.random.normal(kx, (N, nin, H, W), jnp.float32)   # NCHW, like PyTorch

    params, (wd_t, wp_t, wc_t, bc) = init_params(kp, nin, nout)

    out = jax.block_until_ready(dw_con_apply(params, x))
    ref = jax.block_until_ready(reference_nchw(x, wd_t, wp_t, wc_t, bc))
    np.testing.assert_allclose(np.asarray(out), np.asarray(ref),
                               rtol=1e-4, atol=1e-4)

    print("KERNEL_OK")
</pallas_src>

<mosaic_0001>
module attributes {stable_mosaic.version = 11 : i64} {
  func.func @_dw_con_kernel(%arg0: i32, %arg1: memref<8x256xf32, #tpu.memory_space<vmem>>, %arg2: memref<9x8x256xf32, #tpu.memory_space<vmem>>, %arg3: memref<16x8xf32, #tpu.memory_space<vmem>>, %arg4: memref<16x16xf32, #tpu.memory_space<vmem>>, %arg5: memref<16x1xf32, #tpu.memory_space<vmem>>, %arg6: memref<16x256xf32, #tpu.memory_space<vmem>>) attributes {dimension_semantics = [#tpu.dimension_semantics<parallel>], iteration_bounds = array<i64: 1>, scalar_prefetch = 0 : i64, scratch_operands = 0 : i64, tpu.core_type = #tpu.core_type<tc>, window_params = [{transform_indices = @transform_0, window_bounds = array<i64: 8, 256>}, {pipeline_mode = #tpu.pipeline_mode<synchronous>, transform_indices = @transform_1, window_bounds = array<i64: 9, 8, 256>}, {pipeline_mode = #tpu.pipeline_mode<synchronous>, transform_indices = @transform_2, window_bounds = array<i64: 16, 8>}, {pipeline_mode = #tpu.pipeline_mode<synchronous>, transform_indices = @transform_3, window_bounds = array<i64: 16, 16>}, {pipeline_mode = #tpu.pipeline_mode<synchronous>, transform_indices = @transform_4, window_bounds = array<i64: 16, 1>}, {transform_indices = @transform_5, window_bounds = array<i64: 16, 256>}]} {
    %c0 = arith.constant 0 : index
    %c0_0 = arith.constant 0 : index
    %0 = vector.load %arg1[%c0, %c0_0] : memref<8x256xf32, #tpu.memory_space<vmem>>, vector<8x256xf32>
    %c4 = arith.constant 4 : index
    %c0_1 = arith.constant 0 : index
    %c0_2 = arith.constant 0 : index
    %1 = vector.load %arg2[%c4, %c0_1, %c0_2] : memref<9x8x256xf32, #tpu.memory_space<vmem>>, vector<1x8x256xf32>
    %2 = vector.shape_cast %1 : vector<1x8x256xf32> to vector<8x256xf32>
    %3 = arith.mulf %0, %2 : vector<8x256xf32>
    %c17_i32 = arith.constant 17 : i32
    %4 = tpu.dynamic_rotate %0 by %c17_i32 dim 1 : vector<8x256xf32>, i32 -> vector<8x256xf32>
    %c0_3 = arith.constant 0 : index
    %c0_4 = arith.constant 0 : index
    %c0_5 = arith.constant 0 : index
    %5 = vector.load %arg2[%c0_3, %c0_4, %c0_5] : memref<9x8x256xf32, #tpu.memory_space<vmem>>, vector<1x8x256xf32>
    %6 = vector.shape_cast %5 : vector<1x8x256xf32> to vector<8x256xf32>
    %7 = arith.mulf %4, %6 : vector<8x256xf32>
    %8 = arith.addf %3, %7 : vector<8x256xf32>
    %c16_i32 = arith.constant 16 : i32
    %9 = tpu.dynamic_rotate %0 by %c16_i32 dim 1 : vector<8x256xf32>, i32 -> vector<8x256xf32>
    %c1 = arith.constant 1 : index
    %c0_6 = arith.constant 0 : index
    %c0_7 = arith.constant 0 : index
    %10 = vector.load %arg2[%c1, %c0_6, %c0_7] : memref<9x8x256xf32, #tpu.memory_space<vmem>>, vector<1x8x256xf32>
    %11 = vector.shape_cast %10 : vector<1x8x256xf32> to vector<8x256xf32>
    %12 = arith.mulf %9, %11 : vector<8x256xf32>
    %13 = arith.addf %8, %12 : vector<8x256xf32>
    %c15_i32 = arith.constant 15 : i32
    %14 = tpu.dynamic_rotate %0 by %c15_i32 dim 1 : vector<8x256xf32>, i32 -> vector<8x256xf32>
    %c2 = arith.constant 2 : index
    %c0_8 = arith.constant 0 : index
    %c0_9 = arith.constant 0 : index
    %15 = vector.load %arg2[%c2, %c0_8, %c0_9] : memref<9x8x256xf32, #tpu.memory_space<vmem>>, vector<1x8x256xf32>
    %16 = vector.shape_cast %15 : vector<1x8x256xf32> to vector<8x256xf32>
    %17 = arith.mulf %14, %16 : vector<8x256xf32>
    %18 = arith.addf %13, %17 : vector<8x256xf32>
    %c1_i32 = arith.constant 1 : i32
    %19 = tpu.dynamic_rotate %0 by %c1_i32 dim 1 : vector<8x256xf32>, i32 -> vector<8x256xf32>
    %c3 = arith.constant 3 : index
    %c0_10 = arith.constant 0 : index
    %c0_11 = arith.constant 0 : index
    %20 = vector.load %arg2[%c3, %c0_10, %c0_11] : memref<9x8x256xf32, #tpu.memory_space<vmem>>, vector<1x8x256xf32>
    %21 = vector.shape_cast %20 : vector<1x8x256xf32> to vector<8x256xf32>
    %22 = arith.mulf %19, %21 : vector<8x256xf32>
    %23 = arith.addf %18, %22 : vector<8x256xf32>
    %c255_i32 = arith.constant 255 : i32
    %24 = tpu.dynamic_rotate %0 by %c255_i32 dim 1 : vector<8x256xf32>, i32 -> vector<8x256xf32>
    %c5 = arith.constant 5 : index
    %c0_12 = arith.constant 0 : index
    %c0_13 = arith.constant 0 : index
    %25 = vector.load %arg2[%c5, %c0_12, %c0_13] : memref<9x8x256xf32, #tpu.memory_space<vmem>>, vector<1x8x256xf32>
    %26 = vector.shape_cast %25 : vector<1x8x256xf32> to vector<8x256xf32>
    %27 = arith.mulf %24, %26 : vector<8x256xf32>
    %28 = arith.addf %23, %27 : vector<8x256xf32>
    %c241_i32 = arith.constant 241 : i32
    %29 = tpu.dynamic_rotate %0 by %c241_i32 dim 1 : vector<8x256xf32>, i32 -> vector<8x256xf32>
    %c6 = arith.constant 6 : index
    %c0_14 = arith.constant 0 : index
    %c0_15 = arith.constant 0 : index
    %30 = vector.load %arg2[%c6, %c0_14, %c0_15] : memref<9x8x256xf32, #tpu.memory_space<vmem>>, vector<1x8x256xf32>
    %31 = vector.shape_cast %30 : vector<1x8x256xf32> to vector<8x256xf32>
    %32 = arith.mulf %29, %31 : vector<8x256xf32>
    %33 = arith.addf %28, %32 : vector<8x256xf32>
    %c240_i32 = arith.constant 240 : i32
    %34 = tpu.dynamic_rotate %0 by %c240_i32 dim 1 : vector<8x256xf32>, i32 -> vector<8x256xf32>
    %c7 = arith.constant 7 : index
    %c0_16 = arith.constant 0 : index
    %c0_17 = arith.constant 0 : index
    %35 = vector.load %arg2[%c7, %c0_16, %c0_17] : memref<9x8x256xf32, #tpu.memory_space<vmem>>, vector<1x8x256xf32>
    %36 = vector.shape_cast %35 : vector<1x8x256xf32> to vector<8x256xf32>
    %37 = arith.mulf %34, %36 : vector<8x256xf32>
    %38 = arith.addf %33, %37 : vector<8x256xf32>
    %c239_i32 = arith.constant 239 : i32
    %39 = tpu.dynamic_rotate %0 by %c239_i32 dim 1 : vector<8x256xf32>, i32 -> vector<8x256xf32>
    %c8 = arith.constant 8 : index
    %c0_18 = arith.constant 0 : index
    %c0_19 = arith.constant 0 : index
    %40 = vector.load %arg2[%c8, %c0_18, %c0_19] : memref<9x8x256xf32, #tpu.memory_space<vmem>>, vector<1x8x256xf32>
    %41 = vector.shape_cast %40 : vector<1x8x256xf32> to vector<8x256xf32>
    %42 = arith.mulf %39, %41 : vector<8x256xf32>
    %43 = arith.addf %38, %42 : vector<8x256xf32>
    %c0_20 = arith.constant 0 : index
    %c0_21 = arith.constant 0 : index
    %44 = vector.load %arg3[%c0_20, %c0_21] : memref<16x8xf32, #tpu.memory_space<vmem>>, vector<16x8xf32>
    %cst = arith.constant dense<0.000000e+00> : vector<16x256xf32>
    %45 = tpu.matmul %44, %43, %cst {dimension_numbers = #tpu.dot_dimension_numbers<[1], [0], [0], [1], [0, 0, 1, 1], [], []>} : vector<16x8xf32>, vector<8x256xf32>, vector<16x256xf32> -> vector<16x256xf32>
    %cst_22 = arith.constant 0.000000e+00 : f32
    %46 = vector.broadcast %cst_22 : f32 to vector<16x256xf32>
    %47 = arith.maximumf %45, %46 : vector<16x256xf32>
    %c0_23 = arith.constant 0 : index
    %c0_24 = arith.constant 0 : index
    %48 = vector.load %arg4[%c0_23, %c0_24] : memref<16x16xf32, #tpu.memory_space<vmem>>, vector<16x16xf32>
    %cst_25 = arith.constant dense<0.000000e+00> : vector<16x256xf32>
    %49 = tpu.matmul %48, %47, %cst_25 {dimension_numbers = #tpu.dot_dimension_numbers<[1], [0], [0], [1], [0, 0, 1, 1], [], []>} : vector<16x16xf32>, vector<16x256xf32>, vector<16x256xf32> -> vector<16x256xf32>
    %c0_26 = arith.constant 0 : index
    %c0_27 = arith.constant 0 : index
    %50 = vector.load %arg5[%c0_26, %c0_27] : memref<16x1xf32, #tpu.memory_space<vmem>>, vector<16x1xf32>
    %51 = vector.broadcast %50 : vector<16x1xf32> to vector<16x256xf32>
    %52 = arith.addf %49, %51 : vector<16x256xf32>
    %c0_28 = arith.constant 0 : index
    %c0_29 = arith.constant 0 : index
    %53 = vector.load %arg6[%c0_28, %c0_29] : memref<16x256xf32, #tpu.memory_space<vmem>>, vector<16x256xf32>
    tpu.vector_store %arg6[%c0_28, %c0_29], %52 {strides = array<i32>} : memref<16x256xf32, #tpu.memory_space<vmem>>, vector<16x256xf32>,
    return
  }
  func.func @transform_0(%arg0: i32) -> (i32, i32) {
    %c0_i32 = arith.constant 0 : i32
    %c0_i32_0 = arith.constant 0 : i32
    return %arg0, %c0_i32 : i32, i32
  }
  func.func @transform_1(%arg0: i32) -> (i32, i32, i32) {
    %c0_i32 = arith.constant 0 : i32
    %c0_i32_0 = arith.constant 0 : i32
    %c0_i32_1 = arith.constant 0 : i32
    %c0_i32_2 = arith.constant 0 : i32
    return %c0_i32, %c0_i32_0, %c0_i32_1 : i32, i32, i32
  }
  func.func @transform_2(%arg0: i32) -> (i32, i32) {
    %c0_i32 = arith.constant 0 : i32
    %c0_i32_0 = arith.constant 0 : i32
    %c0_i32_1 = arith.constant 0 : i32
    return %c0_i32, %c0_i32_0 : i32, i32
  }
  func.func @transform_3(%arg0: i32) -> (i32, i32) {
    %c0_i32 = arith.constant 0 : i32
    %c0_i32_0 = arith.constant 0 : i32
    %c0_i32_1 = arith.constant 0 : i32
    return %c0_i32, %c0_i32_0 : i32, i32
  }
  func.func @transform_4(%arg0: i32) -> (i32, i32) {
    %c0_i32 = arith.constant 0 : i32
    %c0_i32_0 = arith.constant 0 : i32
    %c0_i32_1 = arith.constant 0 : i32
    return %c0_i32, %c0_i32_0 : i32, i32
  }
  func.func @transform_5(%arg0: i32) -> (i32, i32) {
    %c0_i32 = arith.constant 0 : i32
    %c0_i32_0 = arith.constant 0 : i32
    return %arg0, %c0_i32 : i32, i32
  }
}

</mosaic_0001>

<bundles_post_ra>
// kernel: tpu_custom_call.1
= control target key start
LH: loop header
LB: loop body
LE: loop exit
PB: predicated region body
PF: predicated region fallthrough
CT: control target
= control target key end

     0   :  { %10 = vsyncpa [#allocation3], 0  ;;  %s552_s0 = inlined_call_operand.vmem [shape: f32[8,256], index: 0, kind: input, shape index: {}]   ;;  %s553_s1 = inlined_call_operand.hbm [shape: f32[9,8,256], index: 1, kind: input, shape index: {}]   ;;  %s554_s2 = inlined_call_operand.vmem [shape: f32[16,8], index: 2, kind: input, shape index: {}]   ;;  %s555_s3 = inlined_call_operand.vmem [shape: f32[16,16], index: 3, kind: input, shape index: {}]   ;;  %s556_s4 = inlined_call_operand.vmem [shape: f32[16,1], index: 4, kind: input, shape index: {}]   ;;  %s557_s5 = inlined_call_operand.hbm [shape: f32[16,256], index: 5, kind: output, shape index: {}]  }
   0x1   :  { %11 = vsyncpa [#allocation4], 0  ;;  %s435_s18 = smov [#allocation2]   ;;  %s387_s22 = scalar_lea.hbm %s553_s1, 2304 }
   0x2   :  { %s19_s19 = sshll.u32 %s435_s18, 4  ;;  %p388_p0 = scmp.ne.s32.totalorder %s553_s1, %s387_s22  ;;  %s20_s19 = int_to_ptr.vmem [resolvable:$true] %s19_s19 }
   0x3   :  { %p391_p1 = scmp.lt.u32.totalorder %s387_s22, %s553_s1 }
   0x5   :  { %p393_p2 = pnand %p391_p1, %p388_p0 }
   0x7   :  { %396 = shalt.err (!%p393_p2)
}
   0x8   :  { %s397_s27 = scalar_lea.vmem %s20_s19, 2304  ;;  %p402_p4 = scmp.lt.s32.totalorder %s20_s19, %s20_s19 }
   0x9   :  { %p398_p3 = scmp.ne.s32.totalorder %s20_s19, %s397_s27  ;;  %p403_p5 = scmp.lt.s32.totalorder %s397_s27, %s397_s27 }
   0xb   :  { %p404_p6 = por %p403_p5, %p402_p4 }
   0xd   :  { %p405_p7 = pnand %p404_p6, %p398_p3 }
   0xf   :  { %408 = shalt.err (!%p405_p7)
}
  0x10   :  { %s436_s28 = smov 256   ;;  %s437_s29 = smov 16  }
  0x11   :  { %25 = dma.hbm_to_vmem [thread:$0]  %s553_s1, 2304, %s20_s19, [#allocation3], %s436_s28, %s436_s28, %s437_s29  }
  0x12   :  { %431 = dma.done.wait [#allocation3], 2304  }
  0x13   :  { %432 = vsyncadd [#allocation3], 4294964992  ;;  %v35_v0 = vld [vmem:[%s552_s0] sm:$0xff]  ;;  %s438_s9 = smov 17   ;;  %v36_v1 = vld [vmem:[%s552_s0 + $0x8] sm:$0xff]  ;;  %s439_s12 = smov 15   ;;  %v46_v3 = vlaneseq }
  0x14   :  { %57 = vrot.lane.b32.xlu1 %v35_v0, %s437_s29  ;;  %42 = vrot.lane.b32.xlu0 %v35_v0, %s438_s9  ;;  %s440_s1 = smov 1   ;;  %s441_s13 = smov 127   ;;  %v443_v2 = vmov 0.0   ;;  %v38_v9 = vld [vmem:[#allocation2 + $0x40] sm:$0xff]  ;;  %v39_v10 = vld [vmem:[#allocation2 + $0x48] sm:$0xff]  ;;  %v65_v23 = vld [vmem:[#allocation2 + $0x10] sm:$0xff] }
  0x15   :  { %s442_s14 = smov 113   ;;  %228 = vmatprep.mubr.f32.mxu0 %v443_v2  ;;  %330 = vmatprep.mubr.f32.mxu1 %v443_v2  ;;  %s444_s0 = smov 112   ;;  %v503_v6 = vand.u32 127, %v46_v3  ;;  %v51_v11 = vld [vmem:[#allocation2] sm:$0xff]  ;;  %v52_v12 = vld [vmem:[#allocation2 + $0x8] sm:$0xff]  ;;  %v41_v17 = vmul.f32 %v39_v10, %v36_v1  ;;  %v40_v18 = vmul.f32 %v38_v9, %v35_v0  ;;  %v66_v24 = vld [vmem:[#allocation2 + $0x18] sm:$0xff] }
  0x16   :  { %s445_s15 = smov 111   ;;  %v79_v29 = vld [vmem:[#allocation2 + $0x20] sm:$0xff]  ;;  %v80_v30 = vld [vmem:[#allocation2 + $0x28] sm:$0xff]  ;;  %v93_v37 = vld [vmem:[#allocation2 + $0x30] sm:$0xff]  ;;  %vm157_vm8 = vcmask 64512   ;;  %vm259_vm9 = vcmask 130048  }
  0x17   :  { %vm48_vm0 = vcmp.lt.s32.totalorder %v503_v6, 17  ;;  %vm61_vm1 = vcmp.lt.s32.totalorder %v503_v6, 16  ;;  %vm75_vm2 = vcmp.lt.s32.totalorder %v503_v6, 15  ;;  %vm89_vm3 = vcmp.lt.s32.totalorder %v503_v6, 1  ;;  %v94_v38 = vld [vmem:[#allocation2 + $0x38] sm:$0xff]  ;;  %v107_v45 = vld [vmem:[#allocation2 + $0x50] sm:$0xff] }
  0x18   :  { %59 = vrot.lane.b32.xlu1 %v36_v1, %s437_s29  ;;  %44 = vrot.lane.b32.xlu0 %v36_v1, %s438_s9  ;;  %vm103_vm4 = vcmp.lt.s32.totalorder %v503_v6, 127  ;;  %vm117_vm5 = vcmp.lt.s32.totalorder %v503_v6, 113  ;;  %v108_v46 = vld [vmem:[#allocation2 + $0x58] sm:$0xff]  ;;  %v121_v53 = vld [vmem:[#allocation2 + $0x60] sm:$0xff]  ;;  %v122_v54 = vld [vmem:[#allocation2 + $0x68] sm:$0xff]  ;;  %vm131_vm6 = vcmp.lt.s32.totalorder %v503_v6, 112 }
  0x19   :  { %v135_v61 = vld [vmem:[#allocation2 + $0x70] sm:$0xff]  ;;  %v136_v62 = vld [vmem:[#allocation2 + $0x78] sm:$0xff]  ;;  %vm145_vm7 = vcmp.lt.s32.totalorder %v503_v6, 111  ;;  %v155_v6 = vld [vmem:[%s554_s2] sm:$0xff]  ;;  %s447_s26 = smov [#allocation5]  }
  0x1a   :  { %s352_s27 = sshll.u32 %s447_s26, 4  ;;  %s353_s27 = int_to_ptr.vmem [resolvable:$true] %s352_s27 }
  0x1b   :  { %s409_s30 = scalar_lea.vmem %s353_s27, 512  ;;  %p414_p9 = scmp.lt.s32.totalorder %s353_s27, %s353_s27 }
  0x1c   :  { %73 = vrot.lane.b32.xlu1 %v36_v1, %s439_s12  ;;  %71 = vrot.lane.b32.xlu0 %v35_v0, %s439_s12  ;;  %p410_p8 = scmp.ne.s32.totalorder %s353_s27, %s409_s30  ;;  %p415_p10 = scmp.lt.s32.totalorder %s409_s30, %s409_s30 }
  0x1e   :  { %p416_p11 = por %p415_p10, %p414_p9 }
  0x20   :  { %87 = vrot.lane.b32.xlu1 %v36_v1, %s440_s1  ;;  %85 = vrot.lane.b32.xlu0 %v35_v0, %s440_s1  ;;  %p417_p12 = pnand %p416_p11, %p410_p8 }
  0x24   :  { %101 = vrot.lane.b32.xlu1 %v36_v1, %s441_s13  ;;  %99 = vrot.lane.b32.xlu0 %v35_v0, %s441_s13 }
  0x28   :  { %115 = vrot.lane.b32.xlu1 %v36_v1, %s442_s14  ;;  %113 = vrot.lane.b32.xlu0 %v35_v0, %s442_s14 }
  0x2c   :  { %129 = vrot.lane.b32.xlu1 %v36_v1, %s444_s0  ;;  %127 = vrot.lane.b32.xlu0 %v35_v0, %s444_s0 }
  0x30   :  { %143 = vrot.lane.b32.xlu1 %v36_v1, %s445_s15  ;;  %141 = vrot.lane.b32.xlu0 %v35_v0, %s445_s15 }
  0x86   :  { %v58_v4 = vpop.permute.xlu1 %57  ;;  %v43_v5 = vpop.permute.xlu0 %42 }
  0x8a   :  { %v60_v7 = vpop.permute.xlu1 %59  ;;  %v45_v8 = vpop.permute.xlu0 %44 }
  0x8b   :  { %v49_v13 = vsel %vm48_vm0, %v43_v5, %v45_v8  ;;  %v50_v14 = vsel %vm48_vm0, %v45_v8, %v43_v5  ;;  %v62_v25 = vsel %vm61_vm1, %v58_v4, %v60_v7  ;;  %v63_v26 = vsel %vm61_vm1, %v60_v7, %v58_v4 }
  0x8c   :  { %v53_v19 = vmul.f32 %v51_v11, %v50_v14  ;;  %v54_v20 = vmul.f32 %v52_v12, %v49_v13  ;;  %v67_v33 = vmul.f32 %v65_v23, %v63_v26  ;;  %v68_v34 = vmul.f32 %v66_v24, %v62_v25  ;;  %v149_v13 = vld [vmem:[#allocation2 + $0x80] sm:$0xff]  ;;  %v150_v14 = vld [vmem:[#allocation2 + $0x88] sm:$0xff] }
  0x8e   :  { %v74_v15 = vpop.permute.xlu1 %73  ;;  %v72_v16 = vpop.permute.xlu0 %71  ;;  %v55_v27 = vadd.f32 %v53_v19, %v40_v18  ;;  %v56_v28 = vadd.f32 %v54_v20, %v41_v17 }
  0x8f   :  { %v76_v31 = vsel %vm75_vm2, %v72_v16, %v74_v15  ;;  %v77_v32 = vsel %vm75_vm2, %v74_v15, %v72_v16 }
  0x90   :  { %v70_v41 = vadd.f32 %v68_v34, %v56_v28  ;;  %v69_v42 = vadd.f32 %v67_v33, %v55_v27  ;;  %v81_v43 = vmul.f32 %v79_v29, %v77_v32  ;;  %v82_v44 = vmul.f32 %v80_v30, %v76_v31  ;;  %v156_v27 = vld [vmem:[%s554_s2 + $0x8] sm:$0xff]  ;;  %v247_v28 = vld [vmem:[%s556_s4] sm:$0xff] }
  0x91   :  { %v248_v29 = vld [vmem:[%s556_s4 + $0x8] sm:$0xff]  ;;  %v446_v30 = vmov 0  }
  0x92   :  { %v88_v21 = vpop.permute.xlu1 %87  ;;  %v86_v22 = vpop.permute.xlu0 %85  ;;  %v83_v57 = vadd.f32 %v81_v43, %v69_v42  ;;  %v84_v58 = vadd.f32 %v82_v44, %v70_v41  ;;  %385 = vset.pattern.permute.xlu0 %v446_v30  ;;  %386 = vset.pattern.permute.xlu1 %v446_v30  ;;  %v245_v41 = vld [vmem:[%s555_s3] sm:$0xff]  ;;  %v246_v42 = vld [vmem:[%s555_s3 + $0x8] sm:$0xff] }
  0x93   :  { %v90_v39 = vsel %vm89_vm3, %v86_v22, %v88_v21  ;;  %v91_v40 = vsel %vm89_vm3, %v88_v21, %v86_v22  ;;  %251 = vperm.xlu0 %385, %v247_v28   ;;  %256 = vperm.xlu1 %386, %v248_v29  }
  0x94   :  { %v95_v49 = vmul.f32 %v93_v37, %v91_v40  ;;  %v96_v50 = vmul.f32 %v94_v38, %v90_v39 }
  0x96   :  { %v102_v35 = vpop.permute.xlu1 %101  ;;  %v100_v36 = vpop.permute.xlu0 %99  ;;  %v97_v63 = vadd.f32 %v95_v49, %v83_v57  ;;  %v98_v0 = vadd.f32 %v96_v50, %v84_v58 }
  0x97   :  { %v104_v47 = vsel %vm103_vm4, %v100_v36, %v102_v35  ;;  %v105_v48 = vsel %vm103_vm4, %v102_v35, %v100_v36 }
  0x98   :  { %v109_v59 = vmul.f32 %v107_v45, %v104_v47  ;;  %v110_v60 = vmul.f32 %v108_v46, %v105_v48 }
  0x9a   :  { %v116_v51 = vpop.permute.xlu1 %115  ;;  %v114_v52 = vpop.permute.xlu0 %113  ;;  %v111_v9 = vadd.f32 %v109_v59, %v97_v63  ;;  %v112_v10 = vadd.f32 %v110_v60, %v98_v0 }
  0x9b   :  { %v118_v55 = vsel %vm117_vm5, %v114_v52, %v116_v51  ;;  %v119_v56 = vsel %vm117_vm5, %v116_v51, %v114_v52 }
  0x9c   :  { %v123_v1 = vmul.f32 %v121_v53, %v118_v55  ;;  %v124_v3 = vmul.f32 %v122_v54, %v119_v56 }
  0x9e   :  { %v130_v4 = vpop.permute.xlu1 %129  ;;  %v128_v5 = vpop.permute.xlu0 %127  ;;  %v125_v15 = vadd.f32 %v123_v1, %v111_v9  ;;  %v126_v18 = vadd.f32 %v124_v3, %v112_v10 }
  0x9f   :  { %v132_v7 = vsel %vm131_vm6, %v128_v5, %v130_v4  ;;  %v133_v8 = vsel %vm131_vm6, %v130_v4, %v128_v5 }
  0xa0   :  { %v137_v11 = vmul.f32 %v135_v61, %v132_v7  ;;  %v138_v12 = vmul.f32 %v136_v62, %v133_v8 }
  0xa2   :  { %v144_v16 = vpop.permute.xlu1 %143  ;;  %v142_v17 = vpop.permute.xlu0 %141  ;;  %v140_v22 = vadd.f32 %v138_v12, %v126_v18  ;;  %v139_v24 = vadd.f32 %v137_v11, %v125_v15 }
  0xa3   :  { %v146_v19 = vsel %vm145_vm7, %v142_v17, %v144_v16  ;;  %v147_v20 = vsel %vm145_vm7, %v144_v16, %v142_v17 }
  0xa4   :  { %v151_v21 = vmul.f32 %v149_v13, %v146_v19  ;;  %v152_v23 = vmul.f32 %v150_v14, %v147_v20 }
  0xa6   :  { %v154_v25 = vadd.f32 %v152_v23, %v140_v22  ;;  %v153_v26 = vadd.f32 %v151_v21, %v139_v24 }
  0xa8   :  { %164 = vmatprep.subr.mxu0 %v154_v25 }
  0xa9   :  { %165 = vmatpush1.msra.mxu0 %v153_v26 }
  0xaa   :  { %364 = vmatmul.mubr.msk.f32.vlgmr.msra.gmra.mrb[0].mxu0 %vm157_vm8, %v155_v6 }
  0xab   :  { %234 = vmatprep.mubr.f32.mxu0 %v443_v2 }
  0xae   :  { %365 = vmatmul.mubr.msk.f32.gmra.mrb[2].mxu0 %vm157_vm8, %v156_v27 }
 0x112   :  { %v252_v43 = vpop.permute.xlu0 %251  ;;  %v257_v48 = vpop.permute.xlu1 %256 }
 0x17d   :  { %v230_v31 = vpop.f32.mrb[0].mxu0 }
 0x17e   :  { %v232_v32 = vpop.f32.mrb[1].mxu0  ;;  %v241_v34 = vmax.f32 %v230_v31, 0.0 }
 0x17f   :  { %v242_v37 = vmax.f32 %v232_v32, 0.0 }
 0x181   :  { %v236_v33 = vpop.f32.mrb[2].mxu0 }
 0x182   :  { %v243_v35 = vmax.f32 %v236_v33, 0.0  ;;  %v238_v36 = vpop.f32.mrb[3].mxu0 }
 0x183   :  { %v244_v38 = vmax.f32 %v238_v36, 0.0 }
 0x184   :  { %v370_v39 = vpack.c.bf16 %v243_v35, %v241_v34 }
 0x185   :  { %v368_v40 = vpack.c.bf16 %v244_v38, %v242_v37 }
 0x187   :  { %369 = vmatprep.subr.bf16.mxu1 %v368_v40 }
 0x188   :  { %371 = vmatpush1.bf16.msra.mxu1 %v370_v39 }
 0x18b   :  { %366 = vmatmul.mubr.msk.f32.vlgmr.msra.gmra.mrb[0].mxu1 %vm259_vm9, %v245_v41 }
 0x18c   :  { %336 = vmatprep.mubr.f32.mxu1 %v443_v2 }
 0x18f   :  { %367 = vmatmul.mubr.msk.f32.gmra.mrb[2].mxu1 %vm259_vm9, %v246_v42 }
 0x25e   :  { %v332_v44 = vpop.f32.mrb[0].mxu1 }
 0x25f   :  { %v333_v45 = vadd.f32 %v332_v44, %v252_v43  ;;  %v334_v46 = vpop.f32.mrb[1].mxu1 }
 0x260   :  { %v335_v47 = vadd.f32 %v334_v46, %v252_v43 }
 0x261   :  { %343 = vst [vmem:[#allocation5] sm:$0xff] %v333_v45 }
 0x262   :  { %344 = vst [vmem:[#allocation5 + $0x8] sm:$0xff] %v335_v47  ;;  %v338_v49 = vpop.f32.mrb[2].mxu1 }
 0x263   :  { %v339_v50 = vadd.f32 %v338_v49, %v257_v48  ;;  %v340_v51 = vpop.f32.mrb[3].mxu1 }
 0x264   :  { %v341_v52 = vadd.f32 %v340_v51, %v257_v48 }
 0x265   :  { %345 = vst [vmem:[#allocation5 + $0x10] sm:$0xff] %v339_v50 }
 0x266   :  { %346 = vst [vmem:[#allocation5 + $0x18] sm:$0xff] %v341_v52 }
 0x267   :  { %420 = shalt.err (!%p417_p12)
}
 0x268   :  { %s421_s7 = scalar_lea.hbm %s557_s5, 512 }
 0x269   :  { %p422_p13 = scmp.ne.s32.totalorder %s557_s5, %s421_s7  ;;  %p425_p0 = scmp.lt.u32.totalorder %s421_s7, %s557_s5 }
 0x26b   :  { %p427_p1 = pnand %p425_p0, %p422_p13 }
 0x26d   :  { %430 = shalt.err (!%p427_p1)
}
 0x26e   :  { %358 = dma.vmem_to_hbm [thread:$0]  %s353_s27, 512, %s557_s5, [#allocation4], %s436_s28, %s436_s28, %s437_s29  }
 0x26f   :  { %433 = dma.done.wait [#allocation4], 512  }
 0x270   :  { %434 = vsyncadd [#allocation4], 4294966784 }
 0x271   :  { %362 = vsyncpa [#allocation3], 1 }
 0x272   :  { %363 = vsyncpa [#allocation4], 1 }

</bundles_post_ra>
